<compile_context>
chip_gen: v7x
topology: tpu7x:2x2x1
jax: 0.10.0
libtpu: 0.0.40
codegen_flags: <defaults>
</compile_context>

<pallas_src>
import math

import jax
import jax.numpy as jnp
from jax.experimental import pallas as pl
from jax.experimental.pallas import tpu as pltpu

_HALF_LOG_2PI = 0.5 * math.log(2.0 * math.pi)

_HAS_KERNEL_RNG = all(hasattr(pltpu, name) for name in ("prng_seed", "stateful_normal"))


def _round_up(v: int, m: int) -> int:
    return ((v + m - 1) // m) * m


# ----------------------------- kernel bodies -----------------------------


def _emit(x, eps, action_ref, logprob_ref, mean_ref, std_ref):
    """Shared elementwise math + last-axis reduction for one (tb, 2n) tile."""
    n = action_ref.shape[-1]
    mean = x[:, :n]
    logvar = jnp.clip(x[:, n:], -18.0, 14.0)
    std = jnp.exp(logvar)
    y = mean + std * eps                                  # Normal(mean, std).rsample()
    # log N(y; mean, std) with y = mean + std*eps:
    #   -0.5*eps^2 - log(std) - 0.5*log(2*pi), and log(std) == logvar exactly,
    # so no divide and no log are needed per element.
    per_elem = -0.5 * (eps * eps) - logvar
    logp = jnp.sum(per_elem, axis=-1, keepdims=True) - n * _HALF_LOG_2PI
    action_ref[...] = y
    logprob_ref[...] = logp
    mean_ref[...] = mean
    std_ref[...] = std


def _kernel_rng(seed_ref, x_ref, action_ref, logprob_ref, mean_ref, std_ref):
    # Per-tile deterministic seed: result is independent of how the parallel grid
    # axis is sharded across TensorCores (v7x megacore).
    pltpu.prng_seed(seed_ref[0] + pl.program_id(0))
    eps = pltpu.stateful_normal(action_ref.shape, jnp.float32)
    _emit(x_ref[...], eps, action_ref, logprob_ref, mean_ref, std_ref)


def _kernel_eps(x_ref, eps_ref, action_ref, logprob_ref, mean_ref, std_ref):
    _emit(x_ref[...], eps_ref[...], action_ref, logprob_ref, mean_ref, std_ref)


# ----------------------------- host-side glue -----------------------------


def _pick_tile(B: int, n: int, in_kernel_rng: bool) -> int:
    # Double-buffered f32 bytes per batch row resident in VMEM:
    #   input x (2n) [+ eps (n) when passed in] + outputs action/mean/std (3n) + logprob (1).
    per_row = (5 * n + 1 + (0 if in_kernel_rng else n)) * 4 * 2
    budget = 12 * 1024 * 1024            # fits every generation (v7x 64 MiB, v5e 16 MiB scoped)
    tb = max(8, (budget // per_row) // 8 * 8)
    tb = min(tb, 2048)                   # per-step overhead is already well amortized here
    tb = min(tb, _round_up(B, 8))
    if B >= 16:
        # Keep at least 2 grid steps so v7x can split the parallel axis over its 2 TCs.
        tb = min(tb, _round_up(pl.cdiv(B, 2), 8))
    return tb


def _out_shapes(Bp: int, n: int):
    return (
        jax.ShapeDtypeStruct((Bp, n), jnp.float32),   # action
        jax.ShapeDtypeStruct((Bp, 1), jnp.float32),   # action_logprob
        jax.ShapeDtypeStruct((Bp, n), jnp.float32),   # mean
        jax.ShapeDtypeStruct((Bp, n), jnp.float32),   # std
    )


_COMPILER_PARAMS = pltpu.CompilerParams(
    dimension_semantics=("parallel",),
    vmem_limit_bytes=32 * 1024 * 1024,
)


def _forward_rng(x, n, key, tb, Bp):
    B = x.shape[0]
    xp = x if Bp == B else jnp.pad(x, ((0, Bp - B), (0, 0)))
    seed = jax.random.randint(key, (1,), 0, jnp.iinfo(jnp.int32).max, dtype=jnp.int32)
    imap = lambda i, seed_ref: (i, 0)
    return pl.pallas_call(
        _kernel_rng,
        out_shape=_out_shapes(Bp, n),
        grid_spec=pltpu.PrefetchScalarGridSpec(
            num_scalar_prefetch=1,
            grid=(Bp // tb,),
            in_specs=[pl.BlockSpec((tb, 2 * n), imap)],
            out_specs=[
                pl.BlockSpec((tb, n), imap),
                pl.BlockSpec((tb, 1), imap),
                pl.BlockSpec((tb, n), imap),
                pl.BlockSpec((tb, n), imap),
            ],
        ),
        compiler_params=_COMPILER_PARAMS,
    )(seed, xp)


def _forward_eps(x, n, key, tb, Bp):
    B = x.shape[0]
    eps = jax.random.normal(key, (B, n), dtype=jnp.float32)
    xp = x if Bp == B else jnp.pad(x, ((0, Bp - B), (0, 0)))
    epsp = eps if Bp == B else jnp.pad(eps, ((0, Bp - B), (0, 0)))
    imap = lambda i: (i, 0)
    return pl.pallas_call(
        _kernel_eps,
        out_shape=_out_shapes(Bp, n),
        grid_spec=pltpu.PrefetchScalarGridSpec(
            num_scalar_prefetch=0,
            grid=(Bp // tb,),
            in_specs=[
                pl.BlockSpec((tb, 2 * n), imap),
                pl.BlockSpec((tb, n), imap),
            ],
            out_specs=[
                pl.BlockSpec((tb, n), imap),
                pl.BlockSpec((tb, 1), imap),
                pl.BlockSpec((tb, n), imap),
                pl.BlockSpec((tb, n), imap),
            ],
        ),
        compiler_params=_COMPILER_PARAMS,
    )(xp, epsp)


def gaussian_head_forward(x: jax.Array, n: int, key: jax.Array, *, use_kernel_rng=None):
    """x: [B, 2*n] float32. Returns dict with action, action_logprob, mean, std."""
    B, two_n = x.shape
    assert two_n == 2 * n, f"expected last dim {2 * n}, got {two_n}"
    if use_kernel_rng is None:
        use_kernel_rng = _HAS_KERNEL_RNG

    outs = None
    tb = _pick_tile(B, n, use_kernel_rng)
    Bp = _round_up(B, tb)
    if use_kernel_rng:
        try:
            outs = _forward_rng(x, n, key, tb, Bp)
        except Exception:
            # TODO(synk): in-kernel hardware PRNG not available on this jax/libtpu build;
            # fall back to passing eps from jax.random.normal (extra [B, n] HBM traffic).
            outs = None
    if outs is None:
        tb = _pick_tile(B, n, False)
        Bp = _round_up(B, tb)
        outs = _forward_eps(x, n, key, tb, Bp)

    action, logprob, mean, std = outs
    if Bp != B:
        action, logprob, mean, std = [a[:B] for a in (action, logprob, mean, std)]

    # TODO(synk): torch.distributions.Normal ('dist') object has no Pallas/JAX array
    # equivalent; its parameters (mean, std) are returned instead.
    return {
        "action": action,
        "action_logprob": logprob,
        "mean": mean,
        "std": std,
    }


# ----------------------------- self-test -----------------------------

if __name__ == "__main__":
    key = jax.random.PRNGKey(0)
    k_x, k_eps = jax.random.split(key)

    B, n = 32, 8
    x = jax.random.normal(k_x, (B, 2 * n), dtype=jnp.float32)

    out = gaussian_head_forward(x, n, k_eps)
    jax.block_until_ready(out)

    # Deterministic parts: mean / std must match the reference exactly.
    mean_ref = x[:, :n]
    logvar_ref = jnp.clip(x[:, n:], -18.0, 14.0)
    std_ref = jnp.exp(logvar_ref)

    assert out["action"].shape == (B, n)
    assert out["action_logprob"].shape == (B, 1)
    assert jnp.allclose(out["mean"], mean_ref, atol=1e-6)
    assert jnp.allclose(out["std"], std_ref, atol=1e-5, rtol=1e-5)

    # Stochastic part: recover the implied standard-normal noise and check
    # (a) the reparameterization + log-prob math is self-consistent with
    #     Normal(mean, std).log_prob(action), and
    # (b) the noise looks like N(0, 1) (generous bounds; works for both the
    #     in-kernel PRNG path and the jax.random.normal fallback).
    eps_impl = (out["action"] - mean_ref) / std_ref
    assert bool(jnp.all(jnp.isfinite(eps_impl)))
    assert abs(float(jnp.mean(eps_impl))) < 0.75
    assert 0.4 < float(jnp.std(eps_impl)) < 1.8

    lp_ref = jnp.sum(
        -0.5 * eps_impl * eps_impl - jnp.log(std_ref) - _HALF_LOG_2PI,
        axis=-1, keepdims=True,
    )
    assert jnp.allclose(out["action_logprob"], lp_ref, atol=1e-3, rtol=1e-4)

    print("KERNEL_OK")
</pallas_src>

<mosaic_0001>
module attributes {stable_mosaic.version = 11 : i64} {
  func.func @_kernel_rng(%arg0: i32, %arg1: memref<1xi32, #tpu.memory_space<smem>>, %arg2: memref<16x16xf32, #tpu.memory_space<vmem>>, %arg3: memref<16x8xf32, #tpu.memory_space<vmem>>, %arg4: memref<16x1xf32, #tpu.memory_space<vmem>>, %arg5: memref<16x8xf32, #tpu.memory_space<vmem>>, %arg6: memref<16x8xf32, #tpu.memory_space<vmem>>) attributes {dimension_semantics = [#tpu.dimension_semantics<parallel>], iteration_bounds = array<i64: 2>, scalar_prefetch = 1 : i64, scratch_operands = 0 : i64, tpu.core_type = #tpu.core_type<tc>, window_params = [{transform_indices = @transform_0, window_bounds = array<i64: 16, 16>}, {transform_indices = @transform_1, window_bounds = array<i64: 16, 8>}, {transform_indices = @transform_2, window_bounds = array<i64: 16, 1>}, {transform_indices = @transform_3, window_bounds = array<i64: 16, 8>}, {transform_indices = @transform_4, window_bounds = array<i64: 16, 8>}]} {
    %c0 = arith.constant 0 : index
    %0 = memref.load %arg1[%c0] : memref<1xi32, #tpu.memory_space<smem>>
    %1 = arith.addi %0, %arg0 : i32
    "tpu.prng_set_seed_32"(%1) : (i32) -> ()
    %c0_i32 = arith.constant 0 : i32
    %c0_i32_0 = arith.constant 0 : i32
    %cst = arith.constant -0.99999994 : f32
    %cst_1 = arith.constant 1.000000e+00 : f32
    %2 = vector.broadcast %cst : f32 to vector<1x1xf32>
    %3 = vector.broadcast %cst_1 : f32 to vector<1x1xf32>
    %4 = "tpu.prng_random_bits"() : () -> vector<16x8xi32>
    %c9_i32 = arith.constant 9 : i32
    %5 = vector.broadcast %c9_i32 : i32 to vector<16x8xi32>
    %6 = arith.shrui %4, %5 : vector<16x8xi32>
    %c1065353216_i32 = arith.constant 1065353216 : i32
    %7 = vector.broadcast %c1065353216_i32 : i32 to vector<16x8xi32>
    %8 = arith.ori %6, %7 : vector<16x8xi32>
    %9 = tpu.bitcast %8 : vector<16x8xi32> -> vector<16x8xf32>
    %cst_2 = arith.constant 1.000000e+00 : f32
    %10 = vector.broadcast %cst_2 : f32 to vector<16x8xf32>
    %11 = arith.subf %9, %10 : vector<16x8xf32>
    %12 = arith.subf %3, %2 : vector<1x1xf32>
    %13 = vector.broadcast %12 : vector<1x1xf32> to vector<16x8xf32>
    %14 = arith.mulf %11, %13 : vector<16x8xf32>
    %15 = vector.broadcast %2 : vector<1x1xf32> to vector<16x8xf32>
    %16 = arith.addf %14, %15 : vector<16x8xf32>
    %17 = vector.broadcast %2 : vector<1x1xf32> to vector<16x8xf32>
    %18 = arith.maximumf %17, %16 : vector<16x8xf32>
    %cst_3 = arith.constant 0.000000e+00 : f32
    %19 = vector.broadcast %cst_3 : f32 to vector<16x8xf32>
    %20 = arith.subf %19, %18 : vector<16x8xf32>
    %21 = arith.mulf %18, %20 : vector<16x8xf32>
    %22 = math.log1p %21 : vector<16x8xf32>
    %cst_4 = arith.constant 0.000000e+00 : f32
    %23 = vector.broadcast %cst_4 : f32 to vector<16x8xf32>
    %24 = arith.subf %23, %22 : vector<16x8xf32>
    %cst_5 = arith.constant 5.000000e+00 : f32
    %25 = vector.broadcast %cst_5 : f32 to vector<16x8xf32>
    %26 = arith.cmpf olt, %24, %25 : vector<16x8xf32>
    %cst_6 = arith.constant 2.500000e+00 : f32
    %27 = vector.broadcast %cst_6 : f32 to vector<16x8xf32>
    %28 = arith.subf %24, %27 : vector<16x8xf32>
    %29 = math.sqrt %24 : vector<16x8xf32>
    %cst_7 = arith.constant 3.000000e+00 : f32
    %30 = vector.broadcast %cst_7 : f32 to vector<16x8xf32>
    %31 = arith.subf %29, %30 : vector<16x8xf32>
    %32 = arith.select %26, %28, %31 : vector<16x8xi1>, vector<16x8xf32>
    %cst_8 = arith.constant 2.81022636E-8 : f32
    %cst_9 = arith.constant -2.00214257E-4 : f32
    %33 = vector.broadcast %cst_8 : f32 to vector<16x8xf32>
    %34 = vector.broadcast %cst_9 : f32 to vector<16x8xf32>
    %35 = arith.select %26, %33, %34 : vector<16x8xi1>, vector<16x8xf32>
    %cst_10 = arith.constant 3.43273939E-7 : f32
    %cst_11 = arith.constant 1.00950558E-4 : f32
    %36 = vector.broadcast %cst_10 : f32 to vector<16x8xf32>
    %37 = vector.broadcast %cst_11 : f32 to vector<16x8xf32>
    %38 = arith.select %26, %36, %37 : vector<16x8xi1>, vector<16x8xf32>
    %39 = arith.mulf %35, %32 : vector<16x8xf32>
    %40 = arith.addf %38, %39 : vector<16x8xf32>
    %cst_12 = arith.constant -3.5233877E-6 : f32
    %cst_13 = arith.constant 0.00134934322 : f32
    %41 = vector.broadcast %cst_12 : f32 to vector<16x8xf32>
    %42 = vector.broadcast %cst_13 : f32 to vector<16x8xf32>
    %43 = arith.select %26, %41, %42 : vector<16x8xi1>, vector<16x8xf32>
    %44 = arith.mulf %40, %32 : vector<16x8xf32>
    %45 = arith.addf %43, %44 : vector<16x8xf32>
    %cst_14 = arith.constant -4.39150654E-6 : f32
    %cst_15 = arith.constant -0.00367342844 : f32
    %46 = vector.broadcast %cst_14 : f32 to vector<16x8xf32>
    %47 = vector.broadcast %cst_15 : f32 to vector<16x8xf32>
    %48 = arith.select %26, %46, %47 : vector<16x8xi1>, vector<16x8xf32>
    %49 = arith.mulf %45, %32 : vector<16x8xf32>
    %50 = arith.addf %48, %49 : vector<16x8xf32>
    %cst_16 = arith.constant 2.1858087E-4 : f32
    %cst_17 = arith.constant 0.00573950773 : f32
    %51 = vector.broadcast %cst_16 : f32 to vector<16x8xf32>
    %52 = vector.broadcast %cst_17 : f32 to vector<16x8xf32>
    %53 = arith.select %26, %51, %52 : vector<16x8xi1>, vector<16x8xf32>
    %54 = arith.mulf %50, %32 : vector<16x8xf32>
    %55 = arith.addf %53, %54 : vector<16x8xf32>
    %cst_18 = arith.constant -0.00125372503 : f32
    %cst_19 = arith.constant -0.0076224613 : f32
    %56 = vector.broadcast %cst_18 : f32 to vector<16x8xf32>
    %57 = vector.broadcast %cst_19 : f32 to vector<16x8xf32>
    %58 = arith.select %26, %56, %57 : vector<16x8xi1>, vector<16x8xf32>
    %59 = arith.mulf %55, %32 : vector<16x8xf32>
    %60 = arith.addf %58, %59 : vector<16x8xf32>
    %cst_20 = arith.constant -0.00417768164 : f32
    %cst_21 = arith.constant 0.00943887047 : f32
    %61 = vector.broadcast %cst_20 : f32 to vector<16x8xf32>
    %62 = vector.broadcast %cst_21 : f32 to vector<16x8xf32>
    %63 = arith.select %26, %61, %62 : vector<16x8xi1>, vector<16x8xf32>
    %64 = arith.mulf %60, %32 : vector<16x8xf32>
    %65 = arith.addf %63, %64 : vector<16x8xf32>
    %cst_22 = arith.constant 0.246640727 : f32
    %cst_23 = arith.constant 1.00167406 : f32
    %66 = vector.broadcast %cst_22 : f32 to vector<16x8xf32>
    %67 = vector.broadcast %cst_23 : f32 to vector<16x8xf32>
    %68 = arith.select %26, %66, %67 : vector<16x8xi1>, vector<16x8xf32>
    %69 = arith.mulf %65, %32 : vector<16x8xf32>
    %70 = arith.addf %68, %69 : vector<16x8xf32>
    %cst_24 = arith.constant 1.50140941 : f32
    %cst_25 = arith.constant 2.83297682 : f32
    %71 = vector.broadcast %cst_24 : f32 to vector<16x8xf32>
    %72 = vector.broadcast %cst_25 : f32 to vector<16x8xf32>
    %73 = arith.select %26, %71, %72 : vector<16x8xi1>, vector<16x8xf32>
    %74 = arith.mulf %70, %32 : vector<16x8xf32>
    %75 = arith.addf %73, %74 : vector<16x8xf32>
    %76 = math.absf %18 : vector<16x8xf32>
    %cst_26 = arith.constant 1.000000e+00 : f32
    %77 = vector.broadcast %cst_26 : f32 to vector<16x8xf32>
    %78 = arith.cmpf oeq, %76, %77 : vector<16x8xf32>
    %cst_27 = arith.constant 0x7F800000 : f32
    %79 = vector.broadcast %cst_27 : f32 to vector<16x8xf32>
    %80 = arith.mulf %79, %18 : vector<16x8xf32>
    %81 = arith.mulf %75, %18 : vector<16x8xf32>
    %82 = arith.select %78, %80, %81 : vector<16x8xi1>, vector<16x8xf32>
    %cst_28 = arith.constant 1.41421354 : f32
    %83 = vector.broadcast %cst_28 : f32 to vector<16x8xf32>
    %84 = arith.mulf %83, %82 : vector<16x8xf32>
    %c0_29 = arith.constant 0 : index
    %c0_30 = arith.constant 0 : index
    %85 = vector.load %arg2[%c0_29, %c0_30] : memref<16x16xf32, #tpu.memory_space<vmem>>, vector<16x16xf32>
    %86 = vector.extract_strided_slice %85 {offsets = [0, 0], sizes = [16, 8], strides = [1, 1]} : vector<16x16xf32> to vector<16x8xf32>
    %87 = vector.extract_strided_slice %85 {offsets = [0, 8], sizes = [16, 8], strides = [1, 1]} : vector<16x16xf32> to vector<16x8xf32>
    %cst_31 = arith.constant -1.800000e+01 : f32
    %cst_32 = arith.constant 1.400000e+01 : f32
    %88 = vector.broadcast %cst_31 : f32 to vector<16x8xf32>
    %89 = arith.maximumf %88, %87 : vector<16x8xf32>
    %90 = vector.broadcast %cst_32 : f32 to vector<16x8xf32>
    %91 = arith.minimumf %90, %89 : vector<16x8xf32>
    %92 = math.exp %91 : vector<16x8xf32>
    %93 = arith.mulf %92, %84 : vector<16x8xf32>
    %94 = arith.addf %86, %93 : vector<16x8xf32>
    %95 = arith.mulf %84, %84 : vector<16x8xf32>
    %cst_33 = arith.constant -5.000000e-01 : f32
    %96 = vector.broadcast %cst_33 : f32 to vector<16x8xf32>
    %97 = arith.mulf %96, %95 : vector<16x8xf32>
    %98 = arith.subf %97, %91 : vector<16x8xf32>
    %cst_34 = arith.constant dense<0.000000e+00> : vector<16xf32>
    %99 = vector.multi_reduction <add>, %98, %cst_34 [1] : vector<16x8xf32> to vector<16xf32>
    %100 = vector.shape_cast %99 : vector<16xf32> to vector<16x1xf32>
    %cst_35 = arith.constant 7.35150814 : f32
    %101 = vector.broadcast %cst_35 : f32 to vector<16x1xf32>
    %102 = arith.subf %100, %101 : vector<16x1xf32>
    %c0_36 = arith.constant 0 : index
    %c0_37 = arith.constant 0 : index
    %103 = vector.load %arg3[%c0_36, %c0_37] : memref<16x8xf32, #tpu.memory_space<vmem>>, vector<16x8xf32>
    tpu.vector_store %arg3[%c0_36, %c0_37], %94 {strides = array<i32>} : memref<16x8xf32, #tpu.memory_space<vmem>>, vector<16x8xf32>,
    %c0_38 = arith.constant 0 : index
    %c0_39 = arith.constant 0 : index
    %104 = vector.load %arg4[%c0_38, %c0_39] : memref<16x1xf32, #tpu.memory_space<vmem>>, vector<16x1xf32>
    tpu.vector_store %arg4[%c0_38, %c0_39], %102 {strides = array<i32>} : memref<16x1xf32, #tpu.memory_space<vmem>>, vector<16x1xf32>,
    %c0_40 = arith.constant 0 : index
    %c0_41 = arith.constant 0 : index
    %105 = vector.load %arg5[%c0_40, %c0_41] : memref<16x8xf32, #tpu.memory_space<vmem>>, vector<16x8xf32>
    tpu.vector_store %arg5[%c0_40, %c0_41], %86 {strides = array<i32>} : memref<16x8xf32, #tpu.memory_space<vmem>>, vector<16x8xf32>,
    %c0_42 = arith.constant 0 : index
    %c0_43 = arith.constant 0 : index
    %106 = vector.load %arg6[%c0_42, %c0_43] : memref<16x8xf32, #tpu.memory_space<vmem>>, vector<16x8xf32>
    tpu.vector_store %arg6[%c0_42, %c0_43], %92 {strides = array<i32>} : memref<16x8xf32, #tpu.memory_space<vmem>>, vector<16x8xf32>,
    return
  }
  func.func @transform_0(%arg0: i32, %arg1: memref<1xi32, #tpu.memory_space<smem>>) -> (i32, i32) {
    %c0_i32 = arith.constant 0 : i32
    %c0_i32_0 = arith.constant 0 : i32
    return %arg0, %c0_i32 : i32, i32
  }
  func.func @transform_1(%arg0: i32, %arg1: memref<1xi32, #tpu.memory_space<smem>>) -> (i32, i32) {
    %c0_i32 = arith.constant 0 : i32
    %c0_i32_0 = arith.constant 0 : i32
    return %arg0, %c0_i32 : i32, i32
  }
  func.func @transform_2(%arg0: i32, %arg1: memref<1xi32, #tpu.memory_space<smem>>) -> (i32, i32) {
    %c0_i32 = arith.constant 0 : i32
    %c0_i32_0 = arith.constant 0 : i32
    return %arg0, %c0_i32 : i32, i32
  }
  func.func @transform_3(%arg0: i32, %arg1: memref<1xi32, #tpu.memory_space<smem>>) -> (i32, i32) {
    %c0_i32 = arith.constant 0 : i32
    %c0_i32_0 = arith.constant 0 : i32
    return %arg0, %c0_i32 : i32, i32
  }
  func.func @transform_4(%arg0: i32, %arg1: memref<1xi32, #tpu.memory_space<smem>>) -> (i32, i32) {
    %c0_i32 = arith.constant 0 : i32
    %c0_i32_0 = arith.constant 0 : i32
    return %arg0, %c0_i32 : i32, i32
  }
}

module attributes {stable_mosaic.version = 11 : i64} {
  func.func @_kernel_eps(%arg0: i32, %arg1: memref<16x16xf32, #tpu.memory_space<vmem>>, %arg2: memref<16x8xf32, #tpu.memory_space<vmem>>, %arg3: memref<16x8xf32, #tpu.memory_space<vmem>>, %arg4: memref<16x1xf32, #tpu.memory_space<vmem>>, %arg5: memref<16x8xf32, #tpu.memory_space<vmem>>, %arg6: memref<16x8xf32, #tpu.memory_space<vmem>>) attributes {dimension_semantics = [#tpu.dimension_semantics<parallel>], iteration_bounds = array<i64: 2>, scalar_prefetch = 0 : i64, scratch_operands = 0 : i64, tpu.core_type = #tpu.core_type<tc>, window_params = [{transform_indices = @transform_0, window_bounds = array<i64: 16, 16>}, {transform_indices = @transform_1, window_bounds = array<i64: 16, 8>}, {transform_indices = @transform_2, window_bounds = array<i64: 16, 8>}, {transform_indices = @transform_3, window_bounds = array<i64: 16, 1>}, {transform_indices = @transform_4, window_bounds = array<i64: 16, 8>}, {transform_indices = @transform_5, window_bounds = array<i64: 16, 8>}]} {
    %c0 = arith.constant 0 : index
    %c0_0 = arith.constant 0 : index
    %0 = vector.load %arg1[%c0, %c0_0] : memref<16x16xf32, #tpu.memory_space<vmem>>, vector<16x16xf32>
    %c0_1 = arith.constant 0 : index
    %c0_2 = arith.constant 0 : index
    %1 = vector.load %arg2[%c0_1, %c0_2] : memref<16x8xf32, #tpu.memory_space<vmem>>, vector<16x8xf32>
    %2 = vector.extract_strided_slice %0 {offsets = [0, 0], sizes = [16, 8], strides = [1, 1]} : vector<16x16xf32> to vector<16x8xf32>
    %3 = vector.extract_strided_slice %0 {offsets = [0, 8], sizes = [16, 8], strides = [1, 1]} : vector<16x16xf32> to vector<16x8xf32>
    %cst = arith.constant -1.800000e+01 : f32
    %cst_3 = arith.constant 1.400000e+01 : f32
    %4 = vector.broadcast %cst : f32 to vector<16x8xf32>
    %5 = arith.maximumf %4, %3 : vector<16x8xf32>
    %6 = vector.broadcast %cst_3 : f32 to vector<16x8xf32>
    %7 = arith.minimumf %6, %5 : vector<16x8xf32>
    %8 = math.exp %7 : vector<16x8xf32>
    %9 = arith.mulf %8, %1 : vector<16x8xf32>
    %10 = arith.addf %2, %9 : vector<16x8xf32>
    %11 = arith.mulf %1, %1 : vector<16x8xf32>
    %cst_4 = arith.constant -5.000000e-01 : f32
    %12 = vector.broadcast %cst_4 : f32 to vector<16x8xf32>
    %13 = arith.mulf %12, %11 : vector<16x8xf32>
    %14 = arith.subf %13, %7 : vector<16x8xf32>
    %cst_5 = arith.constant dense<0.000000e+00> : vector<16xf32>
    %15 = vector.multi_reduction <add>, %14, %cst_5 [1] : vector<16x8xf32> to vector<16xf32>
    %16 = vector.shape_cast %15 : vector<16xf32> to vector<16x1xf32>
    %cst_6 = arith.constant 7.35150814 : f32
    %17 = vector.broadcast %cst_6 : f32 to vector<16x1xf32>
    %18 = arith.subf %16, %17 : vector<16x1xf32>
    %c0_7 = arith.constant 0 : index
    %c0_8 = arith.constant 0 : index
    %19 = vector.load %arg3[%c0_7, %c0_8] : memref<16x8xf32, #tpu.memory_space<vmem>>, vector<16x8xf32>
    tpu.vector_store %arg3[%c0_7, %c0_8], %10 {strides = array<i32>} : memref<16x8xf32, #tpu.memory_space<vmem>>, vector<16x8xf32>,
    %c0_9 = arith.constant 0 : index
    %c0_10 = arith.constant 0 : index
    %20 = vector.load %arg4[%c0_9, %c0_10] : memref<16x1xf32, #tpu.memory_space<vmem>>, vector<16x1xf32>
    tpu.vector_store %arg4[%c0_9, %c0_10], %18 {strides = array<i32>} : memref<16x1xf32, #tpu.memory_space<vmem>>, vector<16x1xf32>,
    %c0_11 = arith.constant 0 : index
    %c0_12 = arith.constant 0 : index
    %21 = vector.load %arg5[%c0_11, %c0_12] : memref<16x8xf32, #tpu.memory_space<vmem>>, vector<16x8xf32>
    tpu.vector_store %arg5[%c0_11, %c0_12], %2 {strides = array<i32>} : memref<16x8xf32, #tpu.memory_space<vmem>>, vector<16x8xf32>,
    %c0_13 = arith.constant 0 : index
    %c0_14 = arith.constant 0 : index
    %22 = vector.load %arg6[%c0_13, %c0_14] : memref<16x8xf32, #tpu.memory_space<vmem>>, vector<16x8xf32>
    tpu.vector_store %arg6[%c0_13, %c0_14], %8 {strides = array<i32>} : memref<16x8xf32, #tpu.memory_space<vmem>>, vector<16x8xf32>,
    return
  }
  func.func @transform_0(%arg0: i32) -> (i32, i32) {
    %c0_i32 = arith.constant 0 : i32
    %c0_i32_0 = arith.constant 0 : i32
    return %arg0, %c0_i32 : i32, i32
  }
  func.func @transform_1(%arg0: i32) -> (i32, i32) {
    %c0_i32 = arith.constant 0 : i32
    %c0_i32_0 = arith.constant 0 : i32
    return %arg0, %c0_i32 : i32, i32
  }
  func.func @transform_2(%arg0: i32) -> (i32, i32) {
    %c0_i32 = arith.constant 0 : i32
    %c0_i32_0 = arith.constant 0 : i32
    return %arg0, %c0_i32 : i32, i32
  }
  func.func @transform_3(%arg0: i32) -> (i32, i32) {
    %c0_i32 = arith.constant 0 : i32
    %c0_i32_0 = arith.constant 0 : i32
    return %arg0, %c0_i32 : i32, i32
  }
  func.func @transform_4(%arg0: i32) -> (i32, i32) {
    %c0_i32 = arith.constant 0 : i32
    %c0_i32_0 = arith.constant 0 : i32
    return %arg0, %c0_i32 : i32, i32
  }
  func.func @transform_5(%arg0: i32) -> (i32, i32) {
    %c0_i32 = arith.constant 0 : i32
    %c0_i32_0 = arith.constant 0 : i32
    return %arg0, %c0_i32 : i32, i32
  }
}

</mosaic_0001>

<bundles_post_ra>
// kernel: tpu_custom_call.1
= control target key start
LH: loop header
LB: loop body
LE: loop exit
PB: predicated region body
PF: predicated region fallthrough
CT: control target
= control target key end

     0   :  { %s827_s20 = smov 0   ;;  %s983_s0 = inlined_call_operand.<no memory space> [shape: s32[1], index: 0, kind: input, shape index: {}]   ;;  %s984_s1 = inlined_call_operand.vmem [shape: f32[32,16], index: 1, kind: input, shape index: {}]   ;;  %s985_s2 = inlined_call_operand.vmem [shape: f32[32,8], index: 2, kind: output, shape index: {0}]   ;;  %s986_s3 = inlined_call_operand.vmem [shape: f32[32,1], index: 3, kind: output, shape index: {1}]   ;;  %s987_s4 = inlined_call_operand.vmem [shape: f32[32,8], index: 4, kind: output, shape index: {2}]   ;;  %s988_s5 = inlined_call_operand.vmem [shape: f32[32,8], index: 5, kind: output, shape index: {3}]  }
   0x1   :  { %11 = sst [smem:[#allocation3]] %s983_s0 }
   0x2 LB: > { %s719_s21 = sadd.s32 4294967295, %s781_s20   ;;  %p723_p0 = scmp.ge.s32.totalorder %s781_s20, 1  ;;  %s781_s20 = sphi %s827_s20, %s17_s20  }
   0x3   : > { %p172_p1 = scmp.lt.s32.totalorder %s781_s20, 3 }
   0x5   : > { %p173_p2 = pnand %p723_p0, %p172_p1 }
   0x6   : > { %s724_s22 = sshll.u32 (!%p173_p2), %s719_s21, 1  ;;  %s243_s23 = sld [smem:[#allocation3]] (!%p173_p2)  ;;  %v245_v0 = vlaneseq (!%p173_p2)  ;;  %vm535_vm0 = vcmask (!%p173_p2), 64512   ;;  %vm546_vm11 = vcmask (!%p173_p2), 7168  }
   0x7   : > { %176 = sbr.rel (%p173_p2) target bundleno = 490 (0x1ea), region = 24  ;;  %p214_p3 = scmp.lt.s32.totalorder (!%p173_p2), %s724_s22, 3 }
   0x8   : > { %s783_s6 = smov (!%p173_p2), 120   ;;  %s793_s7 = smov (!%p173_p2), 8  }
   0xc   : > { %s244_s30 = sadd.s32 (!%p173_p2), %s719_s21, %s243_s23 }
   0xd   : > { %v853_v5 = vstv (!%p173_p2), %s244_s30 }
   0xe   : > { %s990_s22 = smov (!%p214_p3, %s724_s22), 3  ;;  %v249_v6 = vadd.s32 %v853_v5, %v245_v0  ;;  %v247_v23 = vxor.u32 %v853_v5, %v853_v5 }
   0xf   : > { %s835_s0 = sshll.u32 %s990_s22, 3 }
  0x10   : > { %s217_s26 = scalar_lea.vmem %s984_s1, %s835_s0  ;;  %s235_s29 = scalar_lea.vmem %s987_s4, %s835_s0  ;;  %v250_v8 = vadd.s32 %v249_v6, %v249_v6  ;;  %v251_v9 = vshll.u32 %v249_v6, 13  ;;  %v252_v10 = vshrl.u32 %v249_v6, 19  ;;  %v868_v28 = vxor.u32 466688986, %v247_v23 }
  0x11   : > { %v845_v1 = vld [vmem:[%s217_s26] sm:$0xff]  ;;  %v847_v2 = vld [vmem:[%s217_s26 + $0x8] sm:$0xff]  ;;  %s229_s10 = scalar_lea.vmem %s986_s3, %s835_s0  ;;  %s223_s13 = scalar_lea.vmem %s985_s2, %s835_s0 }
  0x12   : > { %v493_v3 = vmax.f32 %v845_v1, -18.0  ;;  %549 = vst.msk [vmem:[%s235_s29] sm:$0xff] %vm535_vm0, %v845_v1  ;;  %v494_v4 = vmax.f32 %v847_v2, -18.0  ;;  %550 = vst.msk [vmem:[%s235_s29 + $0x8] sm:$0xff] %vm535_vm0, %v847_v2  ;;  %v253_v12 = vor.u32 %v252_v10, %v251_v9  ;;  %s241_s16 = scalar_lea.vmem %s988_s5, %s835_s0 }
  0x14   : > { %v858_v7 = vmin.f32 %v493_v3, 14.0  ;;  %v862_v11 = vmin.f32 %v494_v4, 14.0  ;;  %v254_v13 = vxor.u32 %v253_v12, %v250_v8 }
  0x16   : > { %527 = vrot.lane.b32.xlu0 %v858_v7, %s783_s6  ;;  %v255_v14 = vadd.s32 %v254_v13, %v250_v8  ;;  %v256_v15 = vshll.u32 %v254_v13, 15  ;;  %v257_v16 = vshrl.u32 %v254_v13, 17 }
  0x18   : > { %v258_v17 = vor.u32 %v257_v16, %v256_v15 }
  0x1a   : > { %529 = vrot.lane.b32.xlu0 %v862_v11, %s783_s6  ;;  %v259_v18 = vxor.u32 %v258_v17, %v255_v14 }
  0x1c   : > { %v260_v19 = vadd.s32 %v259_v18, %v255_v14  ;;  %v261_v20 = vshll.u32 %v259_v18, 26  ;;  %v262_v21 = vshrl.u32 %v259_v18, 6 }
  0x1e   : > { %v263_v22 = vor.u32 %v262_v21, %v261_v20 }
  0x20   : > { %v264_v24 = vxor.u32 %v263_v22, %v260_v19 }
  0x22   : > { %v265_v25 = vadd.s32 %v264_v24, %v260_v19  ;;  %v266_v26 = vshll.u32 %v264_v24, 6  ;;  %v267_v27 = vshrl.u32 %v264_v24, 26 }
  0x24   : > { %v268_v29 = vor.u32 %v267_v27, %v266_v26  ;;  %v270_v31 = vadd.s32 %v265_v25, %v853_v5 }
  0x26   : > { %v269_v30 = vxor.u32 %v268_v29, %v265_v25 }
  0x28   : > { %v271_v32 = vadd.s32 %v269_v30, %v868_v28 }
  0x2a   : > { %v272_v33 = vadd.s32 1, %v271_v32 }
  0x2c   : > { %v273_v34 = vadd.s32 %v272_v33, %v270_v31  ;;  %v274_v35 = vshll.u32 %v272_v33, 17  ;;  %v275_v36 = vshrl.u32 %v272_v33, 15 }
  0x2e   : > { %v276_v37 = vor.u32 %v275_v36, %v274_v35 }
  0x30   : > { %v277_v38 = vxor.u32 %v276_v37, %v273_v34 }
  0x32   : > { %v278_v39 = vadd.s32 %v277_v38, %v273_v34  ;;  %v279_v40 = vshll.u32 %v277_v38, 29  ;;  %v280_v41 = vshrl.u32 %v277_v38, 3 }
  0x34   : > { %v281_v42 = vor.u32 %v280_v41, %v279_v40 }
  0x36   : > { %v282_v43 = vxor.u32 %v281_v42, %v278_v39 }
  0x38   : > { %v283_v44 = vadd.s32 %v282_v43, %v278_v39  ;;  %v284_v45 = vshll.u32 %v282_v43, 16  ;;  %v285_v46 = vshrl.u32 %v282_v43, 16 }
  0x3a   : > { %v286_v47 = vor.u32 %v285_v46, %v284_v45 }
  0x3c   : > { %v287_v48 = vxor.u32 %v286_v47, %v283_v44 }
  0x3e   : > { %v288_v49 = vadd.s32 %v287_v48, %v283_v44  ;;  %v289_v50 = vshll.u32 %v287_v48, 24  ;;  %v290_v51 = vshrl.u32 %v287_v48, 8 }
  0x40   : > { %v291_v52 = vor.u32 %v290_v51, %v289_v50  ;;  %v293_v54 = vadd.s32 %v288_v49, %v868_v28 }
  0x42   : > { %v292_v53 = vxor.u32 %v291_v52, %v288_v49 }
  0x44   : > { %v294_v55 = vadd.s32 %v292_v53, %v853_v5 }
  0x46   : > { %v295_v56 = vadd.s32 2, %v294_v55 }
  0x48   : > { %v296_v57 = vadd.s32 %v295_v56, %v293_v54  ;;  %v297_v58 = vshll.u32 %v295_v56, 13  ;;  %v298_v59 = vshrl.u32 %v295_v56, 19 }
  0x4a   : > { %v299_v60 = vor.u32 %v298_v59, %v297_v58 }
  0x4c   : > { %v300_v61 = vxor.u32 %v299_v60, %v296_v57 }
  0x4e   : > { %v301_v62 = vadd.s32 %v300_v61, %v296_v57  ;;  %v302_v63 = vshll.u32 %v300_v61, 15  ;;  %v303_v0 = vshrl.u32 %v300_v61, 17 }
  0x50   : > { %v304_v3 = vor.u32 %v303_v0, %v302_v63 }
  0x52   : > { %v305_v4 = vxor.u32 %v304_v3, %v301_v62 }
  0x54   : > { %v306_v6 = vadd.s32 %v305_v4, %v301_v62  ;;  %v307_v8 = vshll.u32 %v305_v4, 26  ;;  %v308_v9 = vshrl.u32 %v305_v4, 6 }
  0x56   : > { %v309_v10 = vor.u32 %v308_v9, %v307_v8 }
  0x58   : > { %v310_v12 = vxor.u32 %v309_v10, %v306_v6 }
  0x5a   : > { %v311_v13 = vadd.s32 %v310_v12, %v306_v6  ;;  %v312_v14 = vshll.u32 %v310_v12, 6  ;;  %v313_v15 = vshrl.u32 %v310_v12, 26 }
  0x5c   : > { %v314_v16 = vor.u32 %v313_v15, %v312_v14  ;;  %v316_v18 = vadd.s32 %v311_v13, %v853_v5 }
  0x5e   : > { %v315_v17 = vxor.u32 %v314_v16, %v311_v13 }
  0x60   : > { %v317_v19 = vadd.s32 %v315_v17, %v853_v5 }
  0x62   : > { %v318_v20 = vadd.s32 3, %v317_v19 }
  0x64   : > { %v319_v21 = vadd.s32 %v318_v20, %v316_v18  ;;  %v320_v22 = vshll.u32 %v318_v20, 17  ;;  %v321_v23 = vshrl.u32 %v318_v20, 15 }
  0x66   : > { %v322_v24 = vor.u32 %v321_v23, %v320_v22 }
  0x68   : > { %v323_v25 = vxor.u32 %v322_v24, %v319_v21 }
  0x6a   : > { %v324_v26 = vadd.s32 %v323_v25, %v319_v21  ;;  %v325_v27 = vshll.u32 %v323_v25, 29  ;;  %v326_v29 = vshrl.u32 %v323_v25, 3 }
  0x6c   : > { %v327_v30 = vor.u32 %v326_v29, %v325_v27 }
  0x6e   : > { %v328_v31 = vxor.u32 %v327_v30, %v324_v26 }
  0x70   : > { %v329_v32 = vadd.s32 %v328_v31, %v324_v26  ;;  %v330_v33 = vshll.u32 %v328_v31, 16  ;;  %v331_v34 = vshrl.u32 %v328_v31, 16 }
  0x72   : > { %v332_v35 = vor.u32 %v331_v34, %v330_v33 }
  0x74   : > { %v333_v36 = vxor.u32 %v332_v35, %v329_v32 }
  0x76   : > { %v334_v37 = vadd.s32 %v333_v36, %v329_v32  ;;  %v335_v38 = vshll.u32 %v333_v36, 24  ;;  %v336_v39 = vshrl.u32 %v333_v36, 8 }
  0x78   : > { %v337_v40 = vor.u32 %v336_v39, %v335_v38  ;;  %v339_v42 = vadd.s32 %v334_v37, %v853_v5 }
  0x7a   : > { %v338_v41 = vxor.u32 %v337_v40, %v334_v37 }
  0x7c   : > { %v340_v43 = vadd.s32 %v338_v41, %v868_v28 }
  0x7e   : > { %v341_v44 = vadd.s32 4, %v340_v43 }
  0x80   : > { %v342_v45 = vadd.s32 %v341_v44, %v339_v42  ;;  %v343_v46 = vshll.u32 %v341_v44, 13  ;;  %v344_v47 = vshrl.u32 %v341_v44, 19 }
  0x82   : > { %v345_v48 = vor.u32 %v344_v47, %v343_v46 }
  0x84   : > { %v346_v49 = vxor.u32 %v345_v48, %v342_v45 }
  0x86   : > { %v347_v50 = vadd.s32 %v346_v49, %v342_v45  ;;  %v348_v51 = vshll.u32 %v346_v49, 15  ;;  %v349_v52 = vshrl.u32 %v346_v49, 17 }
  0x88   : > { %v350_v53 = vor.u32 %v349_v52, %v348_v51 }
  0x8a   : > { %v351_v54 = vxor.u32 %v350_v53, %v347_v50 }
  0x8c   : > { %v352_v55 = vadd.s32 %v351_v54, %v347_v50  ;;  %v353_v56 = vshll.u32 %v351_v54, 26  ;;  %v354_v57 = vshrl.u32 %v351_v54, 6 }
  0x8e   : > { %v355_v58 = vor.u32 %v354_v57, %v353_v56 }
  0x90   : > { %v356_v59 = vxor.u32 %v355_v58, %v352_v55  ;;  %v784_v58 = vmov -0.00020021426  }
  0x92   : > { %v357_v60 = vadd.s32 %v356_v59, %v352_v55  ;;  %v358_v61 = vshll.u32 %v356_v59, 6  ;;  %v359_v62 = vshrl.u32 %v356_v59, 26 }
  0x94   : > { %v360_v63 = vor.u32 %v359_v62, %v358_v61  ;;  %v362_v3 = vadd.s32 %v357_v60, %v868_v28 }
  0x96   : > { %v361_v0 = vxor.u32 %v360_v63, %v357_v60  ;;  %v785_v63 = vmov 0.00010095056  }
  0x98   : > { %v363_v4 = vadd.s32 %v361_v0, %v853_v5 }
  0x9a   : > { %v364_v6 = vadd.s32 5, %v363_v4 }
  0x9c   : > { %v365_v8 = vxor.u32 %v364_v6, %v362_v3 }
  0x9e   : > { %366 = set.rngseed %v365_v8 }
  0x9f   : > { %v367_v9 = vrng }
  0xa0   : > { %v369_v10 = vshrl.u32 %v367_v9, 9  ;;  %v368_v12 = vrng }
  0xa1   : > { %v370_v13 = vshrl.u32 %v368_v12, 9 }
  0xa2   : > { %v371_v14 = vor.u32 1065353216, %v369_v10 }
  0xa3   : > { %v372_v15 = vor.u32 1065353216, %v370_v13  ;;  %v786_v13 = vmov 0.0013493432  }
  0xa4   : > { %v734_v16 = vadd.f32 -1.0, %v371_v14 }
  0xa5   : > { %v735_v17 = vadd.f32 -1.0, %v372_v15 }
  0xa6   : > { %v377_v18 = vmul.f32 2.0, %v734_v16 }
  0xa7   : > { %v378_v19 = vmul.f32 2.0, %v735_v17 }
  0xa8   : > { %v379_v20 = vadd.f32 -0.99999994, %v377_v18 }
  0xa9   : > { %v380_v21 = vadd.f32 -0.99999994, %v378_v19 }
  0xaa   : > { %v880_v22 = vmax.f32 %v379_v20, -0.99999994  ;;  %v787_v20 = vmov -0.0036734284  }
  0xab   : > { %v882_v28 = vmax.f32 %v380_v21, -0.99999994 }
  0xac   : > { %v383_v5 = vsub.f32 0.0, %v880_v22 }
  0xad   : > { %v384_v23 = vsub.f32 0.0, %v882_v28 }
  0xae   : > { %v385_v24 = vmul.f32 %v383_v5, %v880_v22 }
  0xaf   : > { %v386_v25 = vmul.f32 %v384_v23, %v882_v28 }
  0xb0   : > { %v387_v26 = vadd.f32 1.0, %v385_v24  ;;  %v390_v29 = vmul.f32 -0.5, %v385_v24  ;;  %v393_v32 = vand.u32 2147483647, %v385_v24 }
  0xb1   : > { %v396_v27 = vadd.f32 1.0, %v386_v25  ;;  %v399_v30 = vmul.f32 -0.5, %v386_v25  ;;  %v402_v34 = vand.u32 2147483647, %v386_v25 }
  0xb2   : > { %763 = vlog2.f32 %v387_v26  ;;  %v391_v31 = vadd.f32 1.0, %v390_v29  ;;  %vm394_vm1 = vcmp.lt.f32.partialorder %v393_v32, 0.0004427343 }
  0xb3   : > { %765 = vlog2.f32 %v396_v27  ;;  %v400_v33 = vadd.f32 1.0, %v399_v30  ;;  %vm403_vm2 = vcmp.lt.f32.partialorder %v402_v34, 0.0004427343  ;;  %v788_v27 = vmov 0.0057395077  }
  0xb4   : > { %v392_v38 = vmul.f32 %v391_v31, %v385_v24 }
  0xb5   : > { %v401_v40 = vmul.f32 %v400_v33, %v386_v25 }
  0xbc   : > { %v764_v35 = vpop.eup %763 }
  0xbd   : > { %v766_v36 = vpop.eup %765  ;;  %v389_v37 = vmul.f32 0.6931472, %v764_v35  ;;  %v789_v35 = vmov -0.0076224613  }
  0xbe   : > { %v398_v39 = vmul.f32 0.6931472, %v766_v36 }
  0xbf   : > { %v395_v41 = vsel %vm394_vm1, %v392_v38, %v389_v37 }
  0xc0   : > { %v888_v42 = vsub.f32 0.0, %v395_v41  ;;  %v404_v43 = vsel %vm403_vm2, %v401_v40, %v398_v39 }
  0xc1   : > { %v890_v44 = vsub.f32 0.0, %v404_v43  ;;  %v790_v43 = vmov 0.0094388705  }
  0xc2   : > { %767 = vrsqrt.f32 %v888_v42  ;;  %vm413_vm3 = vcmp.eq.f32.partialorder %v888_v42, inf  ;;  %v416_v48 = vand.u32 2147483648, %v888_v42  ;;  %vm415_vm4 = vcmp.eq.f32.partialorder %v888_v42, 0.0 }
  0xc3   : > { %769 = vrsqrt.f32 %v890_v44  ;;  %vm407_vm5 = vcmp.lt.f32.partialorder %v888_v42, 5.0  ;;  %vm420_vm6 = vcmp.eq.f32.partialorder %v890_v44, inf  ;;  %v423_v52 = vand.u32 2147483648, %v890_v44 }
  0xc4   : > { %v736_v53 = vadd.f32 -2.5, %v888_v42  ;;  %vm422_vm7 = vcmp.eq.f32.partialorder %v890_v44, 0.0  ;;  %vm408_vm8 = vcmp.lt.f32.partialorder %v890_v44, 5.0  ;;  %v429_v59 = vsel %vm407_vm5, 2.8102264e-08, %v784_v58 }
  0xc5   : > { %v737_v60 = vadd.f32 -2.5, %v890_v44  ;;  %v431_v0 = vsel %vm407_vm5, 3.4327394e-07, %v785_v63  ;;  %v430_v3 = vsel %vm408_vm8, 2.8102264e-08, %v784_v58 }
  0xc6   : > { %v432_v9 = vsel %vm408_vm8, 3.4327394e-07, %v785_v63  ;;  %v437_v14 = vsel %vm407_vm5, -3.5233877e-06, %v786_v13  ;;  %v438_v17 = vsel %vm408_vm8, -3.5233877e-06, %v786_v13 }
  0xc7   : > { %v443_v21 = vsel %vm407_vm5, -4.3915065e-06, %v787_v20  ;;  %v444_v24 = vsel %vm408_vm8, -4.3915065e-06, %v787_v20  ;;  %v449_v29 = vsel %vm407_vm5, 0.00021858087, %v788_v27 }
  0xc8   : > { %v450_v32 = vsel %vm408_vm8, 0.00021858087, %v788_v27  ;;  %v455_v36 = vsel %vm407_vm5, -0.001253725, %v789_v35  ;;  %v456_v39 = vsel %vm408_vm8, -0.001253725, %v789_v35 }
  0xcc   : > { %v768_v45 = vpop.eup %767 }
  0xcd   : > { %v412_v46 = vmul.f32 %v768_v45, %v888_v42  ;;  %v770_v47 = vpop.eup %769  ;;  %v461_v45 = vsel %vm407_vm5, -0.0041776816, %v790_v43 }
  0xce   : > { %v419_v50 = vmul.f32 %v770_v47, %v890_v44 }
  0xcf   : > { %v414_v49 = vsel %vm413_vm3, %v888_v42, %v412_v46 }
  0xd0   : > { %v417_v51 = vsel %vm415_vm4, %v416_v48, %v414_v49  ;;  %v421_v55 = vsel %vm420_vm6, %v890_v44, %v419_v50  ;;  %v462_v48 = vsel %vm408_vm8, -0.0041776816, %v790_v43 }
  0xd1   : > { %v738_v54 = vadd.f32 -3.0, %v417_v51  ;;  %v424_v56 = vsel %vm422_vm7, %v423_v52, %v421_v55  ;;  %v791_v51 = vmov 1.001674  }
  0xd2   : > { %v739_v61 = vadd.f32 -3.0, %v424_v56  ;;  %v467_v52 = vsel %vm407_vm5, 0.24664073, %v791_v51  ;;  %v468_v55 = vsel %vm408_vm8, 0.24664073, %v791_v51 }
  0xd3   : > { %v427_v57 = vsel %vm407_vm5, %v736_v53, %v738_v54 }
  0xd4   : > { %v433_v62 = vmul.f32 %v429_v59, %v427_v57  ;;  %v428_v4 = vsel %vm408_vm8, %v737_v60, %v739_v61  ;;  %v792_v59 = vmov 2.8329768   ;;  %v479_v61 = vand.u32 2147483647, %v880_v22 }
  0xd5   : > { %v434_v8 = vmul.f32 %v430_v3, %v428_v4  ;;  %v473_v60 = vsel %vm407_vm5, 1.5014094, %v792_v59  ;;  %v480_v3 = vand.u32 2147483647, %v882_v28 }
  0xd6   : > { %v435_v6 = vadd.f32 %v433_v62, %v431_v0  ;;  %v474_v0 = vsel %vm408_vm8, 1.5014094, %v792_v59  ;;  %vm481_vm9 = vcmp.eq.f32.partialorder %v479_v61, 1.0 }
  0xd7   : > { %v436_v12 = vadd.f32 %v434_v8, %v432_v9  ;;  %vm482_vm10 = vcmp.eq.f32.partialorder %v480_v3, 1.0 }
  0xd8   : > { %v439_v10 = vmul.f32 %v435_v6, %v427_v57  ;;  %v483_v6 = vmul.f32 inf, %v880_v22 }
  0xd9   : > { %v440_v16 = vmul.f32 %v436_v12, %v428_v4 }
  0xda   : > { %v441_v15 = vadd.f32 %v439_v10, %v437_v14  ;;  %v484_v10 = vmul.f32 inf, %v882_v28 }
  0xdb   : > { %v442_v19 = vadd.f32 %v440_v16, %v438_v17 }
  0xdc   : > { %v445_v18 = vmul.f32 %v441_v15, %v427_v57  ;;  %v528_v15 = vpop.permute.xlu0 %527 }
  0xdd   : > { %v446_v23 = vmul.f32 %v442_v19, %v428_v4 }
  0xde   : > { %v447_v5 = vadd.f32 %v445_v18, %v443_v21  ;;  %v497_v21 = vmul.f32 1.442695, %v858_v7 }
  0xdf   : > { %v448_v26 = vadd.f32 %v446_v23, %v444_v24 }
  0xe0   : > { %v451_v25 = vmul.f32 %v447_v5, %v427_v57  ;;  %v530_v19 = vpop.permute.xlu0 %529  ;;  %771 = vpow2.f32 %v497_v21  ;;  %v499_v5 = vmul.f32 1.442695, %v862_v11 }
  0xe1   : > { %v452_v31 = vmul.f32 %v448_v26, %v428_v4 }
  0xe2   : > { %v453_v30 = vadd.f32 %v451_v25, %v449_v29  ;;  %773 = vpow2.f32 %v499_v5 }
  0xe3   : > { %v454_v34 = vadd.f32 %v452_v31, %v450_v32 }
  0xe4   : > { %v457_v33 = vmul.f32 %v453_v30, %v427_v57 }
  0xe5   : > { %v458_v38 = vmul.f32 %v454_v34, %v428_v4 }
  0xe6   : > { %v459_v37 = vadd.f32 %v457_v33, %v455_v36 }
  0xe7   : > { %v460_v41 = vadd.f32 %v458_v38, %v456_v39 }
  0xe8   : > { %v463_v40 = vmul.f32 %v459_v37, %v427_v57 }
  0xe9   : > { %v464_v47 = vmul.f32 %v460_v41, %v428_v4 }
  0xea   : > { %v465_v46 = vadd.f32 %v463_v40, %v461_v45  ;;  %v772_v23 = vpop.eup %771 }
  0xeb   : > { %v466_v50 = vadd.f32 %v464_v47, %v462_v48 }
  0xec   : > { %v469_v49 = vmul.f32 %v465_v46, %v427_v57  ;;  %v774_v26 = vpop.eup %773 }
  0xed   : > { %v470_v54 = vmul.f32 %v466_v50, %v428_v4 }
  0xee   : > { %v471_v53 = vadd.f32 %v469_v49, %v467_v52 }
  0xef   : > { %v472_v58 = vadd.f32 %v470_v54, %v468_v55 }
  0xf0   : > { %v475_v56 = vmul.f32 %v471_v53, %v427_v57 }
  0xf1   : > { %v476_v63 = vmul.f32 %v472_v58, %v428_v4 }
  0xf2   : > { %v477_v62 = vadd.f32 %v475_v56, %v473_v60 }
  0xf3   : > { %v478_v9 = vadd.f32 %v476_v63, %v474_v0 }
  0xf4   : > { %v485_v8 = vmul.f32 %v477_v62, %v880_v22 }
  0xf5   : > { %v486_v42 = vmul.f32 %v478_v9, %v882_v28 }
  0xf6   : > { %v487_v57 = vsel %vm481_vm9, %v483_v6, %v485_v8 }
  0xf7   : > { %v489_v12 = vmul.f32 1.4142135, %v487_v57  ;;  %v488_v13 = vsel %vm482_vm10, %v484_v10, %v486_v42 }
  0xf8   : > { %v490_v14 = vmul.f32 1.4142135, %v488_v13 }
  0xf9   : > { %503 = vrot.lane.b32.xlu1 %v489_v12, %s793_s7  ;;  %v521_v44 = vmul.f32 %v489_v12, %v489_v12 }
  0xfa   : > { %v522_v17 = vmul.f32 %v490_v14, %v490_v14 }
  0xfb   : > { %v523_v4 = vmul.f32 -0.5, %v521_v44 }
  0xfc   : > { %v524_v18 = vmul.f32 -0.5, %v522_v17 }
  0xfd   : > { %v533_v16 = vsub.f32 %v523_v4, %v528_v15  ;;  %505 = vrot.lane.b32.xlu1 %v490_v14, %s793_s7 }
  0xfe   : > { %v534_v20 = vsub.f32 %v524_v18, %v530_v19 }
  0xff   : > { %v536_v22 = vsel %vm535_vm0, %v533_v16, 0.0 }
 0x100   : > { %537 = vadd.xlane.f32.xlu0 %v536_v22  ;;  %v539_v28 = vsel %vm535_vm0, %v534_v20, 0.0 }
 0x121   : > { %540 = vadd.xlane.f32.xlu1 %v539_v28 }
 0x16b   : > { %v504_v24 = vpop.permute.xlu1 %503 }
 0x16c   : > { %v509_v25 = vmul.f32 %v772_v23, %v504_v24 }
 0x16e   : > { %513 = vrot.lane.b32.xlu0 %v509_v25, %s783_s6 }
 0x16f   : > { %v506_v27 = vpop.permute.xlu1 %505 }
 0x170   : > { %v510_v29 = vmul.f32 %v774_v26, %v506_v27 }
 0x172   : > { %515 = vrot.lane.b32.xlu1 %v510_v29, %s783_s6  ;;  %553 = vrot.lane.b32.xlu0 %v772_v23, %s783_s6 }
 0x176   : > { %555 = vrot.lane.b32.xlu1 %v774_v26, %s783_s6 }
 0x18d   : > { %v538_v7 = vpop.xlane.xlu0 %537 }
 0x18e   : > { %v740_v11 = vadd.f32 -7.351508, %v538_v7 }
 0x190   : > { %547 = vst.msk [vmem:[%s229_s10] sm:$0xff] %vm546_vm11, %v740_v11 }
 0x1ae   : > { %v541_v30 = vpop.xlane.xlu1 %540 }
 0x1af   : > { %v741_v31 = vadd.f32 -7.351508, %v541_v30 }
 0x1b1   : > { %548 = vst.msk [vmem:[%s229_s10 + $0x8] sm:$0xff] %vm546_vm11, %v741_v31 }
 0x1e0   : > { %v514_v32 = vpop.permute.xlu0 %513 }
 0x1e1   : > { %v519_v33 = vadd.f32 %v514_v32, %v845_v1 }
 0x1e3   : > { %544 = vst.msk [vmem:[%s223_s13] sm:$0xff] %vm535_vm0, %v519_v33 }
 0x1e4   : > { %v516_v34 = vpop.permute.xlu1 %515  ;;  %v554_v35 = vpop.permute.xlu0 %553 }
 0x1e5   : > { %v520_v36 = vadd.f32 %v516_v34, %v847_v2  ;;  %559 = vst.msk [vmem:[%s241_s16] sm:$0xff] %vm535_vm0, %v554_v35 }
 0x1e7   : > { %545 = vst.msk [vmem:[%s223_s13 + $0x8] sm:$0xff] %vm535_vm0, %v520_v36 }
 0x1e8   : > { %v556_v37 = vpop.permute.xlu1 %555 }
 0x1e9   : > { %560 = vst.msk [vmem:[%s241_s16 + $0x8] sm:$0xff] %vm535_vm0, %v556_v37 }
 0x1ea PF: > { %s17_s20 = sadd.s32 1, %s781_s20  }
 0x1eb   : > { %p14_p4 = scmp.ge.s32.totalorder %s17_s20, 4  }
 0x1ed   :  { %16 = sbr.rel (!%p14_p4) target bundleno = 2 (0x2), region = 90 }

// kernel: tpu_custom_call.1
= control target key start
LH: loop header
LB: loop body
LE: loop exit
PB: predicated region body
PF: predicated region fallthrough
CT: control target
= control target key end

     0   :  { %s607_s18 = smov 0   ;;  %s652_s0 = inlined_call_operand.vmem [shape: f32[32,16], index: 0, kind: input, shape index: {}]   ;;  %s653_s1 = inlined_call_operand.vmem [shape: f32[32,8], index: 1, kind: input, shape index: {}]   ;;  %s654_s2 = inlined_call_operand.vmem [shape: f32[32,8], index: 2, kind: output, shape index: {0}]   ;;  %s655_s3 = inlined_call_operand.vmem [shape: f32[32,1], index: 3, kind: output, shape index: {1}]   ;;  %s656_s4 = inlined_call_operand.vmem [shape: f32[32,8], index: 4, kind: output, shape index: {2}]   ;;  %s657_s5 = inlined_call_operand.vmem [shape: f32[32,8], index: 5, kind: output, shape index: {3}]  }
   0x1 LB: > { %s532_s19 = sadd.s32 4294967295, %s573_s18   ;;  %p536_p0 = scmp.ge.s32.totalorder %s573_s18, 1  ;;  %s573_s18 = sphi %s607_s18, %s16_s18  }
   0x2   : > { %p206_p1 = scmp.lt.s32.totalorder %s573_s18, 3 }
   0x4   : > { %p207_p2 = pnand %p536_p0, %p206_p1 }
   0x5   : > { %s537_s20 = sshll.u32 (!%p207_p2), %s532_s19, 1  ;;  %vm336_vm0 = vcmask (!%p207_p2), 64512   ;;  %s575_s6 = smov (!%p207_p2), 8   ;;  %vm347_vm1 = vcmask (!%p207_p2), 7168  }
   0x6   : > { %210 = sbr.rel (%p207_p2) target bundleno = 321 (0x141), region = 28  ;;  %p255_p3 = scmp.lt.s32.totalorder (!%p207_p2), %s537_s20, 3 }
   0x7   : > { %s576_s7 = smov (!%p207_p2), 120  }
   0xd   : > { %s659_s20 = smov (!%p255_p3, %s537_s20), 3 }
   0xe   : > { %s615_s21 = sshll.u32 %s659_s20, 3 }
   0xf   : > { %s264_s24 = scalar_lea.vmem %s653_s1, %s615_s21  ;;  %s258_s27 = scalar_lea.vmem %s652_s0, %s615_s21 }
  0x10   : > { %v292_v0 = vld [vmem:[%s264_s24] sm:$0xff]  ;;  %s282_s30 = scalar_lea.vmem %s656_s4, %s615_s21  ;;  %v291_v2 = vld [vmem:[%s258_s27 + $0x8] sm:$0xff]  ;;  %s270_s10 = scalar_lea.vmem %s654_s2, %s615_s21 }
  0x11   : > { %v290_v1 = vld [vmem:[%s258_s27] sm:$0xff]  ;;  %304 = vrot.lane.b32.xlu1 %v292_v0, %s575_s6  ;;  %v293_v4 = vld [vmem:[%s264_s24 + $0x8] sm:$0xff]  ;;  %351 = vst.msk [vmem:[%s282_s30 + $0x8] sm:$0xff] %vm336_vm0, %v291_v2  ;;  %v295_v5 = vmax.f32 %v291_v2, -18.0  ;;  %v322_v16 = vmul.f32 %v292_v0, %v292_v0  ;;  %s276_s13 = scalar_lea.vmem %s655_s3, %s615_s21  ;;  %s288_s16 = scalar_lea.vmem %s657_s5, %s615_s21 }
  0x12   : > { %v294_v3 = vmax.f32 %v290_v1, -18.0  ;;  %350 = vst.msk [vmem:[%s282_s30] sm:$0xff] %vm336_vm0, %v290_v1  ;;  %v323_v20 = vmul.f32 %v293_v4, %v293_v4 }
  0x13   : > { %v297_v7 = vmin.f32 %v295_v5, 14.0  ;;  %v324_v17 = vmul.f32 -0.5, %v322_v16 }
  0x14   : > { %v296_v6 = vmin.f32 %v294_v3, 14.0  ;;  %v325_v22 = vmul.f32 -0.5, %v323_v20 }
  0x15   : > { %306 = vrot.lane.b32.xlu1 %v293_v4, %s575_s6  ;;  %v300_v9 = vmul.f32 1.442695, %v297_v7 }
  0x16   : > { %328 = vrot.lane.b32.xlu0 %v296_v6, %s576_s7  ;;  %v298_v8 = vmul.f32 1.442695, %v296_v6 }
  0x18   : > { %563 = vpow2.f32 %v298_v8 }
  0x19   : > { %565 = vpow2.f32 %v300_v9 }
  0x1a   : > { %330 = vrot.lane.b32.xlu0 %v297_v7, %s576_s7 }
  0x22   : > { %v564_v10 = vpop.eup %563 }
  0x23   : > { %v566_v13 = vpop.eup %565 }
  0x83   : > { %v305_v11 = vpop.permute.xlu1 %304 }
  0x84   : > { %v310_v12 = vmul.f32 %v564_v10, %v305_v11 }
  0x86   : > { %314 = vrot.lane.b32.xlu0 %v310_v12, %s576_s7 }
  0x87   : > { %v307_v14 = vpop.permute.xlu1 %306 }
  0x88   : > { %v311_v15 = vmul.f32 %v566_v13, %v307_v14  ;;  %v329_v18 = vpop.permute.xlu0 %328 }
  0x89   : > { %v334_v19 = vsub.f32 %v324_v17, %v329_v18 }
  0x8a   : > { %316 = vrot.lane.b32.xlu1 %v311_v15, %s576_s7 }
  0x8b   : > { %v337_v21 = vsel %vm336_vm0, %v334_v19, 0.0 }
  0x8c   : > { %v331_v23 = vpop.permute.xlu0 %330 }
  0x8d   : > { %v335_v24 = vsub.f32 %v325_v22, %v331_v23 }
  0x8f   : > { %v340_v25 = vsel %vm336_vm0, %v335_v24, 0.0 }
  0xa5   : > { %338 = vadd.xlane.f32.xlu0 %v337_v21 }
  0xae   : > { %341 = vadd.xlane.f32.xlu1 %v340_v25 }
  0xbb   : > { %354 = vrot.lane.b32.xlu0 %v564_v10, %s576_s7 }
  0xbf   : > { %356 = vrot.lane.b32.xlu1 %v566_v13, %s576_s7 }
  0xf8   : > { %v315_v26 = vpop.permute.xlu0 %314 }
  0xf9   : > { %v320_v27 = vadd.f32 %v315_v26, %v290_v1 }
  0xfb   : > { %345 = vst.msk [vmem:[%s270_s10] sm:$0xff] %vm336_vm0, %v320_v27 }
  0xfc   : > { %v317_v28 = vpop.permute.xlu1 %316 }
  0xfd   : > { %v321_v29 = vadd.f32 %v317_v28, %v291_v2 }
  0xff   : > { %346 = vst.msk [vmem:[%s270_s10 + $0x8] sm:$0xff] %vm336_vm0, %v321_v29 }
 0x132   : > { %v339_v30 = vpop.xlane.xlu0 %338 }
 0x133   : > { %v549_v31 = vadd.f32 -7.351508, %v339_v30 }
 0x135   : > { %348 = vst.msk [vmem:[%s276_s13] sm:$0xff] %vm347_vm1, %v549_v31 }
 0x136   : > { %v355_v32 = vpop.permute.xlu0 %354 }
 0x137   : > { %360 = vst.msk [vmem:[%s288_s16] sm:$0xff] %vm336_vm0, %v355_v32 }
 0x13b   : > { %v342_v33 = vpop.xlane.xlu1 %341 }
 0x13c   : > { %v550_v34 = vadd.f32 -7.351508, %v342_v33 }
 0x13e   : > { %349 = vst.msk [vmem:[%s276_s13 + $0x8] sm:$0xff] %vm347_vm1, %v550_v34 }
 0x13f   : > { %v357_v35 = vpop.permute.xlu1 %356 }
 0x140   : > { %361 = vst.msk [vmem:[%s288_s16 + $0x8] sm:$0xff] %vm336_vm0, %v357_v35 }
 0x141 PF: > { %s16_s18 = sadd.s32 1, %s573_s18  }
 0x142   : > { %p13_p4 = scmp.ge.s32.totalorder %s16_s18, 4  }
 0x144   :  { %15 = sbr.rel (!%p13_p4) target bundleno = 1 (0x1), region = 97 }

</bundles_post_ra>
